<compile_context>
chip_gen: v7x
topology: tpu7x:2x2x1
jax: 0.10.0
libtpu: 0.0.40
codegen_flags: <defaults>
</compile_context>

<pallas_src>
import math

import jax
import jax.numpy as jnp
from jax.experimental import pallas as pl
from jax.experimental.pallas import tpu as pltpu


def _round_up(v, m):
    return ((v + m - 1) // m) * m


def _pick_tile(n_pad, cap=1024):
    """Largest tile in {1024, 512, 256, 128} that divides n_pad (a multiple of 128)."""
    for t in (1024, 512, 256, 128):
        if t <= cap and n_pad % t == 0:
            return t
    return 128


# --------------------------------------------------------------------------
# Pass 1: fused per-node projections  hl = x @ [W | W_lin]  ->  (N_pad, 2)
#   col 0: message projection h_j   col 1: root/linear projection lin_i
# --------------------------------------------------------------------------
def _proj_kernel(x_ref, w_ref, hl_ref):
    hl_ref[...] = jnp.dot(x_ref[...], w_ref[...],
                          preferred_element_type=jnp.float32)


# --------------------------------------------------------------------------
# Pass 2: tiled aggregation + tanh + feature scaling
#   acc_i += A[i_tile, k_tile] @ h[k_tile]          (accumulated over k)
#   score_i = tanh(acc_i + lin_i + b)
#   xs_i    = x_i * score_i
# --------------------------------------------------------------------------
def _agg_kernel(hl_k_ref, adj_ref, hl_i_ref, x_i_ref, b_ref,
                score_ref, xs_ref, acc_ref):
    k = pl.program_id(1)

    @pl.when(k == 0)
    def _init():
        acc_ref[...] = jnp.zeros_like(acc_ref)

    # bf16 adjacency in HBM/VMEM (exact integer counts), upcast to f32 for the
    # MXU so results match the f32 reference exactly; kernel is DMA-bound so
    # the cast is free.
    adj = adj_ref[...].astype(jnp.float32)                    # (TM, TK)
    h_k = hl_k_ref[...][:, 0:1]                               # (TK, 1)
    acc_ref[...] += jnp.dot(adj, h_k, preferred_element_type=jnp.float32)

    @pl.when(k == pl.num_programs(1) - 1)
    def _finalize():
        lin_i = hl_i_ref[...][:, 1:2]                         # (TM, 1)
        s = jnp.tanh(acc_ref[...] + lin_i + b_ref[0])         # (TM, 1)
        score_ref[...] = s
        # x[perm] * score[perm] == (x * score)[perm]; fuse the scaling here.
        xs_ref[...] = x_i_ref[...] * s


def _sag_score_pallas(x, adj_bf16, w, w_lin, b):
    """Returns (score[N], x_scaled[N, C]) computed with Pallas kernels."""
    N, C = x.shape
    N_pad = adj_bf16.shape[0]
    C_pad = _round_up(max(C, 128), 128)        # lane-dense x / xs
    TM = TK = _pick_tile(N_pad)
    n_i = N_pad // TM
    n_k = N_pad // TK

    x_pad = jnp.zeros((N_pad, C_pad), jnp.float32).at[:N, :C].set(
        x.astype(jnp.float32))
    w_cat = jnp.zeros((C_pad, 2), jnp.float32)
    w_cat = w_cat.at[:C, 0].set(w[:, 0].astype(jnp.float32))
    w_cat = w_cat.at[:C, 1].set(w_lin[:, 0].astype(jnp.float32))
    b1 = b.reshape(1).astype(jnp.float32)

    # ---- Pass 1: projections -------------------------------------------
    hl = pl.pallas_call(
        _proj_kernel,
        out_shape=jax.ShapeDtypeStruct((N_pad, 2), jnp.float32),
        grid_spec=pltpu.PrefetchScalarGridSpec(
            num_scalar_prefetch=0,
            grid=(n_i,),
            in_specs=[pl.BlockSpec((TM, C_pad), lambda i: (i, 0)),
                      pl.BlockSpec((C_pad, 2), lambda i: (0, 0))],
            out_specs=pl.BlockSpec((TM, 2), lambda i: (i, 0))),
        compiler_params=pltpu.CompilerParams(
            dimension_semantics=("parallel",)),
    )(x_pad, w_cat)

    # ---- Pass 2: tiled aggregation + tanh + scaling ----------------------
    score_pad, xs_pad = pl.pallas_call(
        _agg_kernel,
        out_shape=(jax.ShapeDtypeStruct((N_pad, 1), jnp.float32),
                   jax.ShapeDtypeStruct((N_pad, C_pad), jnp.float32)),
        grid_spec=pltpu.PrefetchScalarGridSpec(
            num_scalar_prefetch=0,
            grid=(n_i, n_k),                                   # reduction axis last
            in_specs=[
                pl.BlockSpec((TK, 2), lambda i, k: (k, 0)),    # projections, col block
                pl.BlockSpec((TM, TK), lambda i, k: (i, k)),   # adjacency tile (bf16)
                pl.BlockSpec((TM, 2), lambda i, k: (i, 0)),    # projections, row block
                pl.BlockSpec((TM, C_pad), lambda i, k: (i, 0)),  # x row block
                pl.BlockSpec(memory_space=pltpu.MemorySpace.SMEM),  # bias scalar
            ],
            out_specs=(pl.BlockSpec((TM, 1), lambda i, k: (i, 0)),
                       pl.BlockSpec((TM, C_pad), lambda i, k: (i, 0))),
            scratch_shapes=[pltpu.VMEM((TM, 1), jnp.float32)]),
        compiler_params=pltpu.CompilerParams(
            dimension_semantics=("parallel", "arbitrary"),
            # adj tile <= 2 MiB bf16 (x2 buffers) + x/xs blocks: ~8 MiB peak,
            # comfortably below v7x's 64 MiB physical VMEM.
            vmem_limit_bytes=48 * 1024 * 1024),
    )(hl, adj_bf16, hl, x_pad, b1)

    return score_pad[:N, 0], xs_pad[:N, :C]


def sag_pooling_forward(x, edge_index, params, ratio=0.5,
                        edge_attr=None, batch=None):
    """Mirrors SAGPooling.forward with gnn='GCN' (GraphConv(in_channels, 1))."""
    N, C = x.shape
    if batch is None:
        batch = jnp.zeros((N,), jnp.int32)

    src = edge_index[0]
    dst = edge_index[1]

    # Dense adjacency for the aggregation (A[i, j] = #edges j -> i), padded to
    # a multiple of 128 and stored bf16 (exact for edge multiplicities <= 256)
    # to halve the dominant HBM stream.
    N_pad = _round_up(max(N, 128), 128)
    adj = jnp.zeros((N_pad, N_pad), jnp.float32).at[dst, src].add(1.0)
    adj_bf16 = adj.astype(jnp.bfloat16)

    score, x_scaled = _sag_score_pallas(
        x, adj_bf16, params["weight"], params["lin_weight"], params["lin_bias"])

    # topk(score, ratio, batch): batch is all zeros here, so a single global
    # top-k with k = ceil(ratio * N), indices ordered by descending score.
    k = int(math.ceil(ratio * N))
    _, perm = jax.lax.top_k(score, k)

    x_out = x_scaled[perm]          # == x[perm] * score[perm][:, None]
    batch_out = batch[perm]

    # filter_adj: keep edges with both endpoints selected, remap node ids.
    # TODO(synk): variable-size (data-dependent) output -> eager plain JAX,
    # no clean Pallas equivalent.
    mask = jnp.zeros((N,), bool).at[perm].set(True)
    new_idx = jnp.full((N,), -1, jnp.int32).at[perm].set(
        jnp.arange(k, dtype=jnp.int32))
    keep = mask[src] & mask[dst]
    kept = jnp.nonzero(keep)[0]
    edge_index_out = jnp.stack([new_idx[src[kept]], new_idx[dst[kept]]])
    edge_attr_out = None if edge_attr is None else edge_attr[kept]

    return x_out, edge_index_out, edge_attr_out, batch_out, perm


if __name__ == "__main__":
    key = jax.random.PRNGKey(0)
    N, C, E = 16, 8, 32          # nodes, in_channels, edges
    ratio = 0.5

    k1, k2, k3, k4, k5, k6 = jax.random.split(key, 6)
    x = jax.random.normal(k1, (N, C), dtype=jnp.float32)
    src = jax.random.randint(k2, (E,), 0, N, dtype=jnp.int32)
    dst = jax.random.randint(k3, (E,), 0, N, dtype=jnp.int32)
    edge_index = jnp.stack([src, dst])

    # GraphConv(in_channels=C, out_channels=1) parameters (deterministic init).
    bound = 1.0 / math.sqrt(C)
    params = {
        "weight": jax.random.uniform(k4, (C, 1), jnp.float32, -bound, bound),
        "lin_weight": jax.random.uniform(k5, (C, 1), jnp.float32, -bound, bound),
        "lin_bias": jax.random.uniform(k6, (1,), jnp.float32, -bound, bound),
    }

    x_out, ei_out, ea_out, batch_out, perm = sag_pooling_forward(
        x, edge_index, params, ratio=ratio)

    jax.block_until_ready((x_out, ei_out, batch_out, perm))

    # Lightweight reference check in plain JAX.
    adj_ref = jnp.zeros((N, N), jnp.float32).at[dst, src].add(1.0)
    y_ref = adj_ref @ (x @ params["weight"]) + x @ params["lin_weight"] \
        + params["lin_bias"]
    score_ref = jnp.tanh(y_ref[:, 0])
    kk = int(math.ceil(ratio * N))
    _, perm_ref = jax.lax.top_k(score_ref, kk)
    x_ref_out = x[perm_ref] * score_ref[perm_ref][:, None]
    assert jnp.allclose(x_out, x_ref_out, atol=1e-4), "mismatch vs reference"
    assert jnp.array_equal(perm, perm_ref)

    print("KERNEL_OK")
</pallas_src>

<mosaic_0001>
module attributes {stable_mosaic.version = 11 : i64} {
  func.func @_proj_kernel(%arg0: i32, %arg1: memref<128x128xf32, #tpu.memory_space<vmem>>, %arg2: memref<128x2xf32, #tpu.memory_space<vmem>>, %arg3: memref<128x2xf32, #tpu.memory_space<vmem>>) attributes {dimension_semantics = [#tpu.dimension_semantics<parallel>], iteration_bounds = array<i64: 1>, scalar_prefetch = 0 : i64, scratch_operands = 0 : i64, tpu.core_type = #tpu.core_type<tc>, window_params = [{transform_indices = @transform_0, window_bounds = array<i64: 128, 128>}, {pipeline_mode = #tpu.pipeline_mode<synchronous>, transform_indices = @transform_1, window_bounds = array<i64: 128, 2>}, {transform_indices = @transform_2, window_bounds = array<i64: 128, 2>}]} {
    %c0 = arith.constant 0 : index
    %c0_0 = arith.constant 0 : index
    %0 = vector.load %arg1[%c0, %c0_0] : memref<128x128xf32, #tpu.memory_space<vmem>>, vector<128x128xf32>
    %c0_1 = arith.constant 0 : index
    %c0_2 = arith.constant 0 : index
    %1 = vector.load %arg2[%c0_1, %c0_2] : memref<128x2xf32, #tpu.memory_space<vmem>>, vector<128x2xf32>
    %cst = arith.constant dense<0.000000e+00> : vector<128x2xf32>
    %2 = tpu.matmul %0, %1, %cst {dimension_numbers = #tpu.dot_dimension_numbers<[1], [0], [0], [1], [0, 0, 1, 1], [], []>} : vector<128x128xf32>, vector<128x2xf32>, vector<128x2xf32> -> vector<128x2xf32>
    %c0_3 = arith.constant 0 : index
    %c0_4 = arith.constant 0 : index
    %3 = vector.load %arg3[%c0_3, %c0_4] : memref<128x2xf32, #tpu.memory_space<vmem>>, vector<128x2xf32>
    tpu.vector_store %arg3[%c0_3, %c0_4], %2 {strides = array<i32>} : memref<128x2xf32, #tpu.memory_space<vmem>>, vector<128x2xf32>,
    return
  }
  func.func @transform_0(%arg0: i32) -> (i32, i32) {
    %c0_i32 = arith.constant 0 : i32
    %c0_i32_0 = arith.constant 0 : i32
    return %arg0, %c0_i32 : i32, i32
  }
  func.func @transform_1(%arg0: i32) -> (i32, i32) {
    %c0_i32 = arith.constant 0 : i32
    %c0_i32_0 = arith.constant 0 : i32
    %c0_i32_1 = arith.constant 0 : i32
    return %c0_i32, %c0_i32_0 : i32, i32
  }
  func.func @transform_2(%arg0: i32) -> (i32, i32) {
    %c0_i32 = arith.constant 0 : i32
    %c0_i32_0 = arith.constant 0 : i32
    return %arg0, %c0_i32 : i32, i32
  }
}

</mosaic_0001>

<bundles_post_ra>
// kernel: tpu_custom_call.1
= control target key start
LH: loop header
LB: loop body
LE: loop exit
PB: predicated region body
PF: predicated region fallthrough
CT: control target
= control target key end

     0   :  { %vm188_vm0 = vcmask 15360   ;;  %s520_s1 = inlined_call_operand.vmem [shape: f32[128,2], index: 1, kind: input, shape index: {}]   ;;  %s521_s0 = inlined_call_operand.vmem [shape: f32[128,128], index: 0, kind: input, shape index: {}]   ;;  %s522_s2 = inlined_call_operand.vmem [shape: f32[128,2], index: 2, kind: output, shape index: {}]  }
   0x1   :  { %v27_v0 = vld [vmem:[%s520_s1] sm:$0xff]  ;;  %v28_v1 = vld [vmem:[%s520_s1 + $0x8] sm:$0xff]  ;;  %v29_v2 = vld [vmem:[%s520_s1 + $0x10] sm:$0xff] }
   0x2   :  { %v297_v3 = vpack.c.bf16 %v28_v1, %v27_v0  ;;  %v30_v4 = vld [vmem:[%s520_s1 + $0x18] sm:$0xff]  ;;  %v31_v6 = vld [vmem:[%s520_s1 + $0x20] sm:$0xff]  ;;  %v32_v7 = vld [vmem:[%s520_s1 + $0x28] sm:$0xff] }
   0x3   :  { %v301_v5 = vpack.c.bf16 %v30_v4, %v29_v2  ;;  %v305_v8 = vpack.c.bf16 %v32_v7, %v31_v6  ;;  %v11_v9 = vld [vmem:[%s521_s0] sm:$0xff]  ;;  %v33_v11 = vld [vmem:[%s520_s1 + $0x30] sm:$0xff]  ;;  %v34_v12 = vld [vmem:[%s520_s1 + $0x38] sm:$0xff] }
   0x4   :  { %298 = vmatprep.subr.bf16.mxu0 %v297_v3  ;;  %329 = vmatprep.subr.bf16.mxu1 %v297_v3  ;;  %v19_v10 = vld [vmem:[%s521_s0 + $0x40] sm:$0xff]  ;;  %v309_v13 = vpack.c.bf16 %v34_v12, %v33_v11  ;;  %v36_v15 = vld [vmem:[%s520_s1 + $0x48] sm:$0xff]  ;;  %v37_v17 = vld [vmem:[%s520_s1 + $0x50] sm:$0xff] }
   0x5   :  { %300 = vmatpush3.bf16.msra.mxu0 %v297_v3  ;;  %337 = vmatpush3.bf16.msra.mxu1 %v297_v3  ;;  %v35_v14 = vld [vmem:[%s520_s1 + $0x40] sm:$0xff]  ;;  %v38_v18 = vld [vmem:[%s520_s1 + $0x58] sm:$0xff]  ;;  %v40_v21 = vld [vmem:[%s520_s1 + $0x68] sm:$0xff] }
   0x6   :  { %302 = vmatprep.subr.bf16.mxu0 %v301_v5  ;;  %330 = vmatprep.subr.bf16.mxu1 %v301_v5  ;;  %v313_v16 = vpack.c.bf16 %v36_v15, %v35_v14  ;;  %v317_v19 = vpack.c.bf16 %v38_v18, %v37_v17  ;;  %v39_v20 = vld [vmem:[%s520_s1 + $0x60] sm:$0xff]  ;;  %v41_v23 = vld [vmem:[%s520_s1 + $0x70] sm:$0xff]  ;;  %v42_v24 = vld [vmem:[%s520_s1 + $0x78] sm:$0xff] }
   0x7   :  { %273 = vmatprep.mubr.f32.mxu0 %v11_v9  ;;  %285 = vmatprep.mubr.f32.mxu1 %v19_v10  ;;  %v321_v22 = vpack.c.bf16 %v40_v21, %v39_v20  ;;  %v325_v25 = vpack.c.bf16 %v42_v24, %v41_v23  ;;  %v12_v26 = vld [vmem:[%s521_s0 + $0x8] sm:$0xff]  ;;  %v13_v28 = vld [vmem:[%s521_s0 + $0x10] sm:$0xff]  ;;  %v14_v30 = vld [vmem:[%s521_s0 + $0x18] sm:$0xff] }
   0x8   :  { %v20_v27 = vld [vmem:[%s521_s0 + $0x48] sm:$0xff]  ;;  %v21_v29 = vld [vmem:[%s521_s0 + $0x50] sm:$0xff]  ;;  %v22_v31 = vld [vmem:[%s521_s0 + $0x58] sm:$0xff] }
   0x9   :  { %304 = vmatpush3.bf16.msra.mxu0 %v301_v5  ;;  %338 = vmatpush3.bf16.msra.mxu1 %v301_v5  ;;  %v15_v32 = vld [vmem:[%s521_s0 + $0x20] sm:$0xff]  ;;  %v16_v34 = vld [vmem:[%s521_s0 + $0x28] sm:$0xff]  ;;  %v17_v36 = vld [vmem:[%s521_s0 + $0x30] sm:$0xff] }
   0xa   :  { %306 = vmatprep.subr.bf16.mxu0 %v305_v8  ;;  %331 = vmatprep.subr.bf16.mxu1 %v305_v8  ;;  %v23_v33 = vld [vmem:[%s521_s0 + $0x60] sm:$0xff]  ;;  %v24_v35 = vld [vmem:[%s521_s0 + $0x68] sm:$0xff]  ;;  %v25_v37 = vld [vmem:[%s521_s0 + $0x70] sm:$0xff] }
   0xb   :  { %v18_v38 = vld [vmem:[%s521_s0 + $0x38] sm:$0xff] }
   0xc   :  { %v26_v39 = vld [vmem:[%s521_s0 + $0x78] sm:$0xff] }
   0xd   :  { %308 = vmatpush3.bf16.msra.mxu0 %v305_v8  ;;  %339 = vmatpush3.bf16.msra.mxu1 %v305_v8 }
   0xe   :  { %310 = vmatprep.subr.bf16.mxu0 %v309_v13  ;;  %332 = vmatprep.subr.bf16.mxu1 %v309_v13 }
  0x11   :  { %312 = vmatpush3.bf16.msra.mxu0 %v309_v13  ;;  %340 = vmatpush3.bf16.msra.mxu1 %v309_v13 }
  0x12   :  { %314 = vmatprep.subr.bf16.mxu0 %v313_v16  ;;  %333 = vmatprep.subr.bf16.mxu1 %v313_v16 }
  0x15   :  { %316 = vmatpush3.bf16.msra.mxu0 %v313_v16  ;;  %341 = vmatpush3.bf16.msra.mxu1 %v313_v16 }
  0x16   :  { %318 = vmatprep.subr.bf16.mxu0 %v317_v19  ;;  %334 = vmatprep.subr.bf16.mxu1 %v317_v19 }
  0x19   :  { %320 = vmatpush3.bf16.msra.mxu0 %v317_v19  ;;  %342 = vmatpush3.bf16.msra.mxu1 %v317_v19 }
  0x1a   :  { %322 = vmatprep.subr.bf16.mxu0 %v321_v22  ;;  %335 = vmatprep.subr.bf16.mxu1 %v321_v22 }
  0x1d   :  { %324 = vmatpush3.bf16.msra.mxu0 %v321_v22  ;;  %343 = vmatpush3.bf16.msra.mxu1 %v321_v22 }
  0x1e   :  { %326 = vmatprep.subr.bf16.mxu0 %v325_v25  ;;  %336 = vmatprep.subr.bf16.mxu1 %v325_v25 }
  0x21   :  { %328 = vmatpush3.bf16.msra.mxu0 %v325_v25  ;;  %344 = vmatpush3.bf16.msra.mxu1 %v325_v25 }
  0x24   :  { %274 = vmatmul.mubr.f32.vlgmr.msra.gmra.mrb[0].mxu0 %v12_v26  ;;  %286 = vmatmul.mubr.f32.vlgmr.msra.gmra.mrb[0].mxu1 %v20_v27 }
  0x25   :  { %276 = vmatprep.mubr.f32.mxu0 %v13_v28  ;;  %288 = vmatprep.mubr.f32.mxu1 %v21_v29 }
  0x28   :  { %277 = vmatmul.mubr.f32.gmra.mrb[2].mxu0 %v14_v30  ;;  %289 = vmatmul.mubr.f32.gmra.mrb[2].mxu1 %v22_v31 }
  0x29   :  { %279 = vmatprep.mubr.f32.mxu0 %v15_v32  ;;  %291 = vmatprep.mubr.f32.mxu1 %v23_v33 }
  0x2c   :  { %280 = vmatmul.mubr.f32.gmra.mrb[4].mxu0 %v16_v34  ;;  %292 = vmatmul.mubr.f32.gmra.mrb[4].mxu1 %v24_v35 }
  0x2d   :  { %282 = vmatprep.mubr.f32.mxu0 %v17_v36  ;;  %294 = vmatprep.mubr.f32.mxu1 %v25_v37 }
  0x30   :  { %283 = vmatmul.mubr.f32.gmra.mrb[6].mxu0 %v18_v38  ;;  %295 = vmatmul.mubr.f32.gmra.mrb[6].mxu1 %v26_v39 }
  0xf7   :  { %v275_v40 = vpop.f32.mrb[0].mxu0  ;;  %v287_v41 = vpop.f32.mrb[0].mxu1 }
  0xf8   :  { %190 = vst.msk [vmem:[%s522_s2 + $0x8] sm:$0xff] %vm188_vm0, %v275_v40  ;;  %198 = vst.msk [vmem:[%s522_s2 + $0x48] sm:$0xff] %vm188_vm0, %v287_v41  ;;  %v109_v42 = vpop.f32.mrb[1].mxu0  ;;  %v149_v43 = vpop.f32.mrb[1].mxu1 }
  0xf9   :  { %189 = vst.msk [vmem:[%s522_s2] sm:$0xff] %vm188_vm0, %v109_v42  ;;  %197 = vst.msk [vmem:[%s522_s2 + $0x40] sm:$0xff] %vm188_vm0, %v149_v43 }
  0xfb   :  { %v278_v44 = vpop.f32.mrb[2].mxu0  ;;  %v290_v45 = vpop.f32.mrb[2].mxu1 }
  0xfc   :  { %192 = vst.msk [vmem:[%s522_s2 + $0x18] sm:$0xff] %vm188_vm0, %v278_v44  ;;  %200 = vst.msk [vmem:[%s522_s2 + $0x58] sm:$0xff] %vm188_vm0, %v290_v45  ;;  %v119_v46 = vpop.f32.mrb[3].mxu0  ;;  %v159_v47 = vpop.f32.mrb[3].mxu1 }
  0xfd   :  { %191 = vst.msk [vmem:[%s522_s2 + $0x10] sm:$0xff] %vm188_vm0, %v119_v46  ;;  %199 = vst.msk [vmem:[%s522_s2 + $0x50] sm:$0xff] %vm188_vm0, %v159_v47 }
  0xff   :  { %v281_v48 = vpop.f32.mrb[4].mxu0  ;;  %v293_v49 = vpop.f32.mrb[4].mxu1 }
 0x100   :  { %194 = vst.msk [vmem:[%s522_s2 + $0x28] sm:$0xff] %vm188_vm0, %v281_v48  ;;  %202 = vst.msk [vmem:[%s522_s2 + $0x68] sm:$0xff] %vm188_vm0, %v293_v49  ;;  %v129_v50 = vpop.f32.mrb[5].mxu0  ;;  %v169_v51 = vpop.f32.mrb[5].mxu1 }
 0x101   :  { %193 = vst.msk [vmem:[%s522_s2 + $0x20] sm:$0xff] %vm188_vm0, %v129_v50  ;;  %201 = vst.msk [vmem:[%s522_s2 + $0x60] sm:$0xff] %vm188_vm0, %v169_v51 }
 0x103   :  { %v284_v52 = vpop.f32.mrb[6].mxu0  ;;  %v296_v53 = vpop.f32.mrb[6].mxu1 }
 0x104   :  { %196 = vst.msk [vmem:[%s522_s2 + $0x38] sm:$0xff] %vm188_vm0, %v284_v52  ;;  %204 = vst.msk [vmem:[%s522_s2 + $0x78] sm:$0xff] %vm188_vm0, %v296_v53  ;;  %v139_v54 = vpop.f32.mrb[7].mxu0  ;;  %v179_v55 = vpop.f32.mrb[7].mxu1 }
 0x105   :  { %195 = vst.msk [vmem:[%s522_s2 + $0x30] sm:$0xff] %vm188_vm0, %v139_v54  ;;  %203 = vst.msk [vmem:[%s522_s2 + $0x70] sm:$0xff] %vm188_vm0, %v179_v55 }

</bundles_post_ra>
